<compile_context>
chip_gen: v6e
topology: v6e:2x2x1
jax: 0.10.0
libtpu: 0.0.40
codegen_flags: <defaults>
</compile_context>

<pallas_src>
import jax
import jax.numpy as jnp
from jax import lax
from jax.experimental import pallas as pl
from jax.experimental.pallas import tpu as pltpu

_INV_SQRT2 = 0.7071067811865476  # 1/sqrt(2)

_LANE = 1024                       # lane-dense last dim (multiple of 128)
_TARGET_BLOCK_BYTES = 4 * 1024 * 1024   # ~4 MiB per block (safe on v5e..v7x)
_VMEM_LIMIT_BYTES = 32 * 1024 * 1024    # plenty of headroom everywhere


def _gelu_kernel(x_ref, o_ref):
    # Exact (erf-based) GELU, matching torch.nn.functional.gelu default.
    x = x_ref[...].astype(jnp.float32)
    y = 0.5 * x * (1.0 + lax.erf(x * _INV_SQRT2))
    o_ref[...] = y.astype(o_ref.dtype)


def efficient_memory_gelu(x):
    """Forward of EfficientMemoryGELU: elementwise exact GELU via Pallas."""
    orig_shape = x.shape
    dtype = x.dtype
    itemsize = jnp.dtype(dtype).itemsize
    total = 1
    for d in orig_shape:
        total *= d

    # Packed-sublane granularity: 8 rows for 32-bit, 16 for 16-bit, 32 for 8-bit.
    sub = max(8, 32 // itemsize)

    L = _LANE
    rows = pl.cdiv(total, L)                       # rows needed to hold all elems
    rows_min = pl.cdiv(rows, sub) * sub            # rounded up to sublane tile

    # Rows per block: target ~_TARGET_BLOCK_BYTES, multiple of `sub`,
    # never larger than what the (padded) input actually needs.
    rb = (_TARGET_BLOCK_BYTES // (L * itemsize)) // sub * sub
    rb = max(sub, rb)
    rb = min(rb, rows_min)

    # Pad flat array so rows_padded is an exact multiple of rb.
    rows_padded = pl.cdiv(rows, rb) * rb
    padded_total = rows_padded * L

    x_flat = x.reshape(-1)
    if padded_total != total:
        x_flat = jnp.pad(x_flat, (0, padded_total - total))
    x2d = x_flat.reshape(rows_padded, L)

    grid = (rows_padded // rb,)

    out2d = pl.pallas_call(
        _gelu_kernel,
        out_shape=jax.ShapeDtypeStruct((rows_padded, L), dtype),
        grid_spec=pltpu.PrefetchScalarGridSpec(
            num_scalar_prefetch=0,
            grid=grid,
            in_specs=[pl.BlockSpec((rb, L), lambda i: (i, 0))],
            out_specs=pl.BlockSpec((rb, L), lambda i: (i, 0)),
        ),
        compiler_params=pltpu.CompilerParams(
            dimension_semantics=("parallel",),
            vmem_limit_bytes=_VMEM_LIMIT_BYTES,
        ),
    )(x2d)

    return out2d.reshape(-1)[:total].reshape(orig_shape)


if __name__ == "__main__":
    key = jax.random.PRNGKey(0)

    # Small deterministic input consistent with the module: (batch=2, seq=8, hidden=32)
    x = jax.random.normal(key, (2, 8, 32), dtype=jnp.float32)
    out = jax.block_until_ready(efficient_memory_gelu(x))
    ref = jax.nn.gelu(x, approximate=False)
    assert out.shape == x.shape
    assert jnp.allclose(out, ref, atol=1e-5, rtol=1e-5)

    # Odd shape to exercise the padded-tail path (total not a multiple of 1024).
    x2 = jax.random.normal(jax.random.PRNGKey(1), (3, 7, 160), dtype=jnp.float32)
    out2 = jax.block_until_ready(efficient_memory_gelu(x2))
    ref2 = jax.nn.gelu(x2, approximate=False)
    assert out2.shape == x2.shape
    assert jnp.allclose(out2, ref2, atol=1e-5, rtol=1e-5)

    print("KERNEL_OK")
</pallas_src>

<mosaic_0001>
module attributes {stable_mosaic.version = 11 : i64} {
  func.func @_gelu_kernel(%arg0: i32, %arg1: memref<8x1024xf32, #tpu.memory_space<vmem>>, %arg2: memref<8x1024xf32, #tpu.memory_space<vmem>>) attributes {dimension_semantics = [#tpu.dimension_semantics<parallel>], iteration_bounds = array<i64: 1>, scalar_prefetch = 0 : i64, scratch_operands = 0 : i64, tpu.core_type = #tpu.core_type<tc>, window_params = [{transform_indices = @transform_0, window_bounds = array<i64: 8, 1024>}, {transform_indices = @transform_1, window_bounds = array<i64: 8, 1024>}]} {
    %c0 = arith.constant 0 : index
    %c0_0 = arith.constant 0 : index
    %0 = vector.load %arg1[%c0, %c0_0] : memref<8x1024xf32, #tpu.memory_space<vmem>>, vector<8x1024xf32>
    %cst = arith.constant 5.000000e-01 : f32
    %1 = vector.broadcast %cst : f32 to vector<8x1024xf32>
    %2 = arith.mulf %1, %0 : vector<8x1024xf32>
    %cst_1 = arith.constant 0.707106769 : f32
    %3 = vector.broadcast %cst_1 : f32 to vector<8x1024xf32>
    %4 = arith.mulf %0, %3 : vector<8x1024xf32>
    %5 = math.erf %4 : vector<8x1024xf32>
    %cst_2 = arith.constant 1.000000e+00 : f32
    %6 = vector.broadcast %cst_2 : f32 to vector<8x1024xf32>
    %7 = arith.addf %6, %5 : vector<8x1024xf32>
    %8 = arith.mulf %2, %7 : vector<8x1024xf32>
    %c0_3 = arith.constant 0 : index
    %c0_4 = arith.constant 0 : index
    %9 = vector.load %arg2[%c0_3, %c0_4] : memref<8x1024xf32, #tpu.memory_space<vmem>>, vector<8x1024xf32>
    tpu.vector_store %arg2[%c0_3, %c0_4], %8 {strides = array<i32>} : memref<8x1024xf32, #tpu.memory_space<vmem>>, vector<8x1024xf32>,
    return
  }
  func.func @transform_0(%arg0: i32) -> (i32, i32) {
    %c0_i32 = arith.constant 0 : i32
    %c0_i32_0 = arith.constant 0 : i32
    return %arg0, %c0_i32 : i32, i32
  }
  func.func @transform_1(%arg0: i32) -> (i32, i32) {
    %c0_i32 = arith.constant 0 : i32
    %c0_i32_0 = arith.constant 0 : i32
    return %arg0, %c0_i32 : i32, i32
  }
}

</mosaic_0001>

<bundles_post_ra>
// kernel: tpu_custom_call.1
= control target key start
LH: loop header
LB: loop body
LE: loop exit
PB: predicated region body
PF: predicated region fallthrough
CT: control target
= control target key end

     0   :  { %6 = vsyncpa [#allocation3], 0  ;;  %s172_s0 = inlined_call_operand.hbm [shape: f32[8,1024], index: 0, kind: input, shape index: {}]   ;;  %s173_s1 = inlined_call_operand.hbm [shape: f32[8,1024], index: 1, kind: output, shape index: {}]  }
   0x1   :  { %7 = vsyncpa [#allocation4], 0  ;;  %s154_s6 = smov [#allocation2]  }
   0x2   :  { %s14_s7 = sshll.u32 %s154_s6, 4  ;;  %s15_s7 = int_to_ptr.vmem [resolvable:$true] %s14_s7 }
   0x3   :  { %s118_s8 = scalar_lea.vmem %s15_s7, 1024  ;;  %p123_p1 = scmp.lt.s32.totalorder %s15_s7, %s15_s7 }
   0x4   :  { %p119_p0 = scmp.ne.s32.totalorder %s15_s7, %s118_s8  ;;  %p124_p2 = scmp.lt.s32.totalorder %s118_s8, %s118_s8 }
   0x6   :  { %p125_p3 = por %p124_p2, %p123_p1 }
   0x8   :  { %p126_p4 = pnand %p125_p3, %p119_p0 }
   0xa   :  { %129 = shalt.err (!%p126_p4)
}
   0xb   :  { %17 = dma.hbm_to_vmem [thread:$0]  %s172_s0, 1024, %s15_s7, [#allocation3]  }
   0xc   :  { %150 = dma.done.wait [#allocation3], 1024  }
   0xd   :  { %151 = vsyncadd [#allocation3], 4294966272  ;;  %v21_v0 = vld [vmem:[#allocation2] sm:$0xff]  ;;  %v22_v1 = vld [vmem:[#allocation2 + $0x8] sm:$0xff]  ;;  %s155_s0 = smov [#allocation5]  }
   0xe   :  { %v23_v2 = vld [vmem:[#allocation2 + $0x10] sm:$0xff]  ;;  %v37_v3 = vmul.f32 0.70710677, %v21_v0  ;;  %v38_v4 = vmul.f32 0.70710677, %v22_v1  ;;  %v24_v6 = vld [vmem:[#allocation2 + $0x18] sm:$0xff] }
   0xf   :  { %v39_v5 = vmul.f32 0.70710677, %v23_v2  ;;  %v25_v7 = vld [vmem:[#allocation2 + $0x20] sm:$0xff]  ;;  %v26_v8 = vld [vmem:[#allocation2 + $0x28] sm:$0xff]  ;;  %v40_v9 = vmul.f32 0.70710677, %v24_v6 }
  0x10   :  { %94 = verf.f32 %v37_v3  ;;  %v27_v10 = vld [vmem:[#allocation2 + $0x30] sm:$0xff]  ;;  %v28_v11 = vld [vmem:[#allocation2 + $0x38] sm:$0xff]  ;;  %v41_v12 = vmul.f32 0.70710677, %v25_v7  ;;  %v42_v13 = vmul.f32 0.70710677, %v26_v8 }
  0x11   :  { %96 = verf.f32 %v38_v4  ;;  %v43_v14 = vmul.f32 0.70710677, %v27_v10  ;;  %v44_v15 = vmul.f32 0.70710677, %v28_v11  ;;  %v29_v16 = vmul.f32 0.5, %v21_v0  ;;  %s83_s11 = sshll.u32 %s155_s0, 4  ;;  %s84_s11 = int_to_ptr.vmem [resolvable:$true] %s83_s11 }
  0x12   :  { %98 = verf.f32 %v39_v5  ;;  %v30_v18 = vmul.f32 0.5, %v22_v1  ;;  %v31_v21 = vmul.f32 0.5, %v23_v2  ;;  %v32_v24 = vmul.f32 0.5, %v24_v6  ;;  %s130_s12 = scalar_lea.vmem %s84_s11, 1024  ;;  %p135_p6 = scmp.lt.s32.totalorder %s84_s11, %s84_s11 }
  0x13   :  { %100 = verf.f32 %v40_v9  ;;  %v33_v28 = vmul.f32 0.5, %v25_v7  ;;  %v34_v32 = vmul.f32 0.5, %v26_v8  ;;  %v35_v36 = vmul.f32 0.5, %v27_v10  ;;  %p131_p5 = scmp.ne.s32.totalorder %s84_s11, %s130_s12  ;;  %p136_p7 = scmp.lt.s32.totalorder %s130_s12, %s130_s12 }
  0x14   :  { %102 = verf.f32 %v41_v12  ;;  %v36_v40 = vmul.f32 0.5, %v28_v11 }
  0x15   :  { %104 = verf.f32 %v42_v13  ;;  %p137_p8 = por %p136_p7, %p135_p6 }
  0x16   :  { %106 = verf.f32 %v43_v14 }
  0x17   :  { %108 = verf.f32 %v44_v15  ;;  %p138_p9 = pnand %p137_p8, %p131_p5 }
  0x1d   :  { %v95_v17 = vpop.eup %94 }
  0x1e   :  { %v97_v19 = vpop.eup %96  ;;  %v53_v20 = vadd.f32 1.0, %v95_v17 }
  0x1f   :  { %v99_v22 = vpop.eup %98  ;;  %v54_v23 = vadd.f32 1.0, %v97_v19 }
  0x20   :  { %v101_v25 = vpop.eup %100  ;;  %v61_v26 = vmul.f32 %v53_v20, %v29_v16  ;;  %v55_v27 = vadd.f32 1.0, %v99_v22 }
  0x21   :  { %v103_v29 = vpop.eup %102  ;;  %v62_v30 = vmul.f32 %v54_v23, %v30_v18  ;;  %v56_v31 = vadd.f32 1.0, %v101_v25 }
  0x22   :  { %v105_v33 = vpop.eup %104  ;;  %69 = vst [vmem:[#allocation5] sm:$0xff] %v61_v26  ;;  %v63_v34 = vmul.f32 %v55_v27, %v31_v21  ;;  %v57_v35 = vadd.f32 1.0, %v103_v29 }
  0x23   :  { %v107_v37 = vpop.eup %106  ;;  %70 = vst [vmem:[#allocation5 + $0x8] sm:$0xff] %v62_v30  ;;  %v64_v38 = vmul.f32 %v56_v31, %v32_v24  ;;  %v58_v39 = vadd.f32 1.0, %v105_v33 }
  0x24   :  { %v109_v41 = vpop.eup %108  ;;  %71 = vst [vmem:[#allocation5 + $0x10] sm:$0xff] %v63_v34  ;;  %v65_v42 = vmul.f32 %v57_v35, %v33_v28  ;;  %v59_v43 = vadd.f32 1.0, %v107_v37 }
  0x25   :  { %72 = vst [vmem:[#allocation5 + $0x18] sm:$0xff] %v64_v38  ;;  %v66_v44 = vmul.f32 %v58_v39, %v34_v32  ;;  %v60_v45 = vadd.f32 1.0, %v109_v41 }
  0x26   :  { %73 = vst [vmem:[#allocation5 + $0x20] sm:$0xff] %v65_v42  ;;  %v67_v46 = vmul.f32 %v59_v43, %v35_v36 }
  0x27   :  { %74 = vst [vmem:[#allocation5 + $0x28] sm:$0xff] %v66_v44  ;;  %v68_v47 = vmul.f32 %v60_v45, %v36_v40 }
  0x28   :  { %75 = vst [vmem:[#allocation5 + $0x30] sm:$0xff] %v67_v46 }
  0x29   :  { %76 = vst [vmem:[#allocation5 + $0x38] sm:$0xff] %v68_v47 }
  0x2a   :  { %141 = shalt.err (!%p138_p9)
}
  0x2b   :  { %86 = dma.vmem_to_hbm [thread:$0]  %s84_s11, 1024, %s173_s1, [#allocation4]  }
  0x2c   :  { %152 = dma.done.wait [#allocation4], 1024  }
  0x2d   :  { %153 = vsyncadd [#allocation4], 4294966272 }
  0x2e   :  { %90 = vsyncpa [#allocation3], 1 }
  0x2f   :  { %91 = vsyncpa [#allocation4], 1 }

</bundles_post_ra>
